<compile_context>
chip_gen: v6e
topology: v6e:2x2x1
jax: 0.10.0
libtpu: 0.0.40
codegen_flags: <defaults>
</compile_context>

<pallas_src>
import jax
import jax.numpy as jnp
from jax.experimental import pallas as pl
from jax.experimental.pallas import tpu as pltpu


def _round_up(n, m):
    return ((n + m - 1) // m) * m


def _cdiv(a, b):
    return (a + b - 1) // b


def _vmem_capacity_bytes():
    try:
        return int(pltpu.get_tpu_info().vmem_capacity_bytes)
    except Exception:
        return 64 * 1024 * 1024  # v7x per-TC VMEM: the most restrictive budget.


# Rough per-batch-row VMEM footprint (bytes):
#   x tile f32 double-buffered 2*64 + out tile f32 2*16
#   + f32 intermediates (128+64+32+4)*4 + bf16 re-casts (16+128+64+32)*2  ~= 1.6 KB
_VMEM_BYTES_PER_ROW = 1600
_VMEM_FIXED_BYTES = 2 << 20   # double-buffered weights/biases (~50 KB) + slack.


def _choose_tiling(batch, tile_b):
    """Pick (tile_rows, padded_batch, n_tiles, vmem_limit_bytes)."""
    vmem_cap = _vmem_capacity_bytes()

    # Cap the tile so activation temporaries never blow scoped VMEM
    # (binding on v7x's 64 MiB; generous on v5e/v6e's 128 MiB physical).
    tb_cap = (int(0.8 * vmem_cap) - _VMEM_FIXED_BYTES) // _VMEM_BYTES_PER_ROW
    tb_cap = max(8, (tb_cap // 8) * 8)
    tile_b = max(8, min(tile_b, tb_cap))

    # Prefer >= 2 (ideally 8) tiles when the batch is big enough, so the
    # "parallel" grid axis actually feeds both v7x TensorCores; a single tile
    # would leave one core idle.
    n_tiles = max(_cdiv(batch, tile_b), min(8, _cdiv(batch, 1024)))

    # Near-minimal padding: at most 7 padded rows per tile.
    tb = _round_up(_cdiv(batch, n_tiles), 8)
    b_pad = n_tiles * tb

    est = tb * _VMEM_BYTES_PER_ROW + _VMEM_FIXED_BYTES
    vmem_limit = int(min(0.9 * vmem_cap, max(1.5 * est, 32 << 20)))
    return tb, b_pad, n_tiles, vmem_limit


def _mlp_kernel(x_ref, w1_ref, b1_ref, w2_ref, b2_ref,
                w3_ref, b3_ref, w4_ref, b4_ref, o_ref):
    # One batch tile per grid step. All four matmuls run on the MXU with bf16
    # operands / f32 accumulation; bias adds + ReLUs ride in the VPU slots.
    # The f32->bf16 cast of x happens here (cheap VPU filler under MXU slack),
    # so the wrapper never does a separate cast pass over HBM.
    x = x_ref[...].astype(jnp.bfloat16)                        # (TB, in)

    h1 = jnp.dot(x, w1_ref[...],
                 preferred_element_type=jnp.float32) + b1_ref[...]
    h1 = jnp.maximum(h1, 0.0)                                  # relu1 (dropout1 = identity)

    h2 = jnp.dot(h1.astype(jnp.bfloat16), w2_ref[...],
                 preferred_element_type=jnp.float32) + b2_ref[...]
    h2 = jnp.maximum(h2, 0.0)                                  # relu2 (dropout2 = identity)

    h3 = jnp.dot(h2.astype(jnp.bfloat16), w3_ref[...],
                 preferred_element_type=jnp.float32) + b3_ref[...]
    h3 = jnp.maximum(h3, 0.0)                                  # relu3

    o_ref[...] = (jnp.dot(h3.astype(jnp.bfloat16), w4_ref[...],
                          preferred_element_type=jnp.float32)
                  + b4_ref[...]).astype(o_ref.dtype)


def prepare_params(params):
    """Cast weights to bf16 (MXU operands) once, keep biases as (1, out) f32.

    Call this once and reuse the result across forward calls so the four tiny
    astype ops + HBM round-trips are not re-issued every step.
    """
    prepared = {}
    for i in range(1, 5):
        prepared[f"w{i}"] = jnp.asarray(params[f"w{i}"], jnp.bfloat16)
        prepared[f"b{i}"] = jnp.asarray(params[f"b{i}"], jnp.float32).reshape(1, -1)
    return prepared


def sales_predictor_forward(x, params, *, tile_b=8192):
    """x: (B, input_size) float32; params: dict of (w1,b1,...,w4,b4).

    Weights are stored transposed relative to nn.Linear: shape (in, out), so
    each layer is x @ W + b (== PyTorch x @ W.T + b). Accepts either raw f32
    params (cast per call) or params from prepare_params() (bf16, no re-cast).
    """
    B, in_f = x.shape
    p = params if params["w1"].dtype == jnp.bfloat16 else prepare_params(params)
    out_f = p["w4"].shape[1]

    tb, b_pad, n_tiles, vmem_limit = _choose_tiling(B, tile_b)
    if b_pad != B:
        # Padded rows compute relu(bias)-derived garbage and are sliced off
        # below; no in-kernel batch reductions, so no masking needed.
        x = jnp.pad(x, ((0, b_pad - B), (0, 0)))

    # Weights/biases: constant index_map -> VMEM-resident across batch tiles.
    resident = lambda a: pl.BlockSpec(a.shape, lambda i: (0, 0))

    out = pl.pallas_call(
        _mlp_kernel,
        out_shape=jax.ShapeDtypeStruct((b_pad, out_f), jnp.float32),
        grid=(n_tiles,),
        in_specs=[
            pl.BlockSpec((tb, in_f), lambda i: (i, 0)),
            resident(p["w1"]), resident(p["b1"]),
            resident(p["w2"]), resident(p["b2"]),
            resident(p["w3"]), resident(p["b3"]),
            resident(p["w4"]), resident(p["b4"]),
        ],
        out_specs=pl.BlockSpec((tb, out_f), lambda i: (i, 0)),
        compiler_params=pltpu.CompilerParams(
            dimension_semantics=("parallel",),
            vmem_limit_bytes=vmem_limit),
    )(x,
      p["w1"], p["b1"],
      p["w2"], p["b2"],
      p["w3"], p["b3"],
      p["w4"], p["b4"])

    return out[:B]


def init_params(key, input_size, output_size):
    """Deterministic PyTorch-style (uniform +-1/sqrt(fan_in)) initialization.

    Weights stored (in, out); biases kept 2D (1, out) for clean VMEM layout.
    """
    dims = [(input_size, 128), (128, 64), (64, 32), (32, output_size)]
    params = {}
    for i, (fan_in, fan_out) in enumerate(dims, start=1):
        key, kw, kb = jax.random.split(key, 3)
        bound = 1.0 / jnp.sqrt(jnp.float32(fan_in))
        params[f"w{i}"] = jax.random.uniform(
            kw, (fan_in, fan_out), jnp.float32, -bound, bound)
        params[f"b{i}"] = jax.random.uniform(
            kb, (1, fan_out), jnp.float32, -bound, bound)
    return params


def reference_forward_f32(x, params):
    h = jnp.maximum(x @ params["w1"] + params["b1"], 0.0)
    h = jnp.maximum(h @ params["w2"] + params["b2"], 0.0)
    h = jnp.maximum(h @ params["w3"] + params["b3"], 0.0)
    return h @ params["w4"] + params["b4"]


def reference_forward_bf16(x, params):
    """Mirrors the kernel's bf16-operand / f32-accumulate arithmetic."""
    bf = jnp.bfloat16
    dot = lambda a, b: jnp.dot(a.astype(bf), b.astype(bf),
                               preferred_element_type=jnp.float32)
    h = jnp.maximum(dot(x, params["w1"]) + params["b1"], 0.0)
    h = jnp.maximum(dot(h, params["w2"]) + params["b2"], 0.0)
    h = jnp.maximum(dot(h, params["w3"]) + params["b3"], 0.0)
    return dot(h, params["w4"]) + params["b4"]


if __name__ == "__main__":
    input_size = 16    # X_train.shape[1]
    output_size = 4    # y_train.shape[1]

    key = jax.random.PRNGKey(0)
    key, kx_small, kx_big = jax.random.split(key, 3)
    params = init_params(key, input_size, output_size)
    prepared = prepare_params(params)   # one-time bf16 weight cast

    # --- small demo batch (single tile) ---
    batch = 8
    x = jax.random.normal(kx_small, (batch, input_size), jnp.float32)
    out = jax.block_until_ready(sales_predictor_forward(x, prepared))
    assert out.shape == (batch, output_size)

    ref_bf16 = reference_forward_bf16(x, params)
    assert jnp.allclose(out, ref_bf16, atol=2e-3, rtol=2e-3), \
        float(jnp.max(jnp.abs(out - ref_bf16)))
    ref_f32 = reference_forward_f32(x, params)
    assert jnp.allclose(out, ref_f32, atol=5e-2, rtol=5e-2), \
        float(jnp.max(jnp.abs(out - ref_f32)))

    # --- larger, non-multiple batch: exercises multi-tile grid + row padding ---
    batch_big = 2500
    x_big = jax.random.normal(kx_big, (batch_big, input_size), jnp.float32)
    out_big = jax.block_until_ready(sales_predictor_forward(x_big, prepared))
    assert out_big.shape == (batch_big, output_size)
    ref_big = reference_forward_bf16(x_big, params)
    assert jnp.allclose(out_big, ref_big, atol=2e-3, rtol=2e-3), \
        float(jnp.max(jnp.abs(out_big - ref_big)))

    print("KERNEL_OK")
</pallas_src>

<mosaic_0001>
module attributes {stable_mosaic.version = 11 : i64} {
  func.func @_mlp_kernel(%arg0: i32, %arg1: memref<8x16xf32, #tpu.memory_space<vmem>>, %arg2: memref<16x128xbf16, #tpu.memory_space<vmem>>, %arg3: memref<1x128xf32, #tpu.memory_space<vmem>>, %arg4: memref<128x64xbf16, #tpu.memory_space<vmem>>, %arg5: memref<1x64xf32, #tpu.memory_space<vmem>>, %arg6: memref<64x32xbf16, #tpu.memory_space<vmem>>, %arg7: memref<1x32xf32, #tpu.memory_space<vmem>>, %arg8: memref<32x4xbf16, #tpu.memory_space<vmem>>, %arg9: memref<1x4xf32, #tpu.memory_space<vmem>>, %arg10: memref<8x4xf32, #tpu.memory_space<vmem>>) attributes {dimension_semantics = [#tpu.dimension_semantics<parallel>], iteration_bounds = array<i64: 1>, scalar_prefetch = 0 : i64, scratch_operands = 0 : i64, tpu.core_type = #tpu.core_type<tc>, window_params = [{transform_indices = @transform_0, window_bounds = array<i64: 8, 16>}, {pipeline_mode = #tpu.pipeline_mode<synchronous>, transform_indices = @transform_1, window_bounds = array<i64: 16, 128>}, {pipeline_mode = #tpu.pipeline_mode<synchronous>, transform_indices = @transform_2, window_bounds = array<i64: 1, 128>}, {pipeline_mode = #tpu.pipeline_mode<synchronous>, transform_indices = @transform_3, window_bounds = array<i64: 128, 64>}, {pipeline_mode = #tpu.pipeline_mode<synchronous>, transform_indices = @transform_4, window_bounds = array<i64: 1, 64>}, {pipeline_mode = #tpu.pipeline_mode<synchronous>, transform_indices = @transform_5, window_bounds = array<i64: 64, 32>}, {pipeline_mode = #tpu.pipeline_mode<synchronous>, transform_indices = @transform_6, window_bounds = array<i64: 1, 32>}, {pipeline_mode = #tpu.pipeline_mode<synchronous>, transform_indices = @transform_7, window_bounds = array<i64: 32, 4>}, {pipeline_mode = #tpu.pipeline_mode<synchronous>, transform_indices = @transform_8, window_bounds = array<i64: 1, 4>}, {transform_indices = @transform_9, window_bounds = array<i64: 8, 4>}]} {
    %c0 = arith.constant 0 : index
    %c0_0 = arith.constant 0 : index
    %0 = vector.load %arg1[%c0, %c0_0] : memref<8x16xf32, #tpu.memory_space<vmem>>, vector<8x16xf32>
    %1 = arith.truncf %0 : vector<8x16xf32> to vector<8x16xbf16>
    %c0_1 = arith.constant 0 : index
    %c0_2 = arith.constant 0 : index
    %2 = vector.load %arg2[%c0_1, %c0_2] : memref<16x128xbf16, #tpu.memory_space<vmem>>, vector<16x128xbf16>
    %cst = arith.constant dense<0.000000e+00> : vector<8x128xf32>
    %3 = tpu.matmul %1, %2, %cst {dimension_numbers = #tpu.dot_dimension_numbers<[1], [0], [0], [1], [0, 0, 1, 1], [], []>} : vector<8x16xbf16>, vector<16x128xbf16>, vector<8x128xf32> -> vector<8x128xf32>
    %c0_3 = arith.constant 0 : index
    %c0_4 = arith.constant 0 : index
    %4 = vector.load %arg3[%c0_3, %c0_4] : memref<1x128xf32, #tpu.memory_space<vmem>>, vector<1x128xf32>
    %5 = vector.broadcast %4 : vector<1x128xf32> to vector<8x128xf32>
    %6 = arith.addf %3, %5 : vector<8x128xf32>
    %cst_5 = arith.constant 0.000000e+00 : f32
    %7 = vector.broadcast %cst_5 : f32 to vector<8x128xf32>
    %8 = arith.maximumf %6, %7 : vector<8x128xf32>
    %9 = arith.truncf %8 : vector<8x128xf32> to vector<8x128xbf16>
    %c0_6 = arith.constant 0 : index
    %c0_7 = arith.constant 0 : index
    %10 = vector.load %arg4[%c0_6, %c0_7] : memref<128x64xbf16, #tpu.memory_space<vmem>>, vector<128x64xbf16>
    %cst_8 = arith.constant dense<0.000000e+00> : vector<8x64xf32>
    %11 = tpu.matmul %9, %10, %cst_8 {dimension_numbers = #tpu.dot_dimension_numbers<[1], [0], [0], [1], [0, 0, 1, 1], [], []>} : vector<8x128xbf16>, vector<128x64xbf16>, vector<8x64xf32> -> vector<8x64xf32>
    %c0_9 = arith.constant 0 : index
    %c0_10 = arith.constant 0 : index
    %12 = vector.load %arg5[%c0_9, %c0_10] : memref<1x64xf32, #tpu.memory_space<vmem>>, vector<1x64xf32>
    %13 = vector.broadcast %12 : vector<1x64xf32> to vector<8x64xf32>
    %14 = arith.addf %11, %13 : vector<8x64xf32>
    %cst_11 = arith.constant 0.000000e+00 : f32
    %15 = vector.broadcast %cst_11 : f32 to vector<8x64xf32>
    %16 = arith.maximumf %14, %15 : vector<8x64xf32>
    %17 = arith.truncf %16 : vector<8x64xf32> to vector<8x64xbf16>
    %c0_12 = arith.constant 0 : index
    %c0_13 = arith.constant 0 : index
    %18 = vector.load %arg6[%c0_12, %c0_13] : memref<64x32xbf16, #tpu.memory_space<vmem>>, vector<64x32xbf16>
    %cst_14 = arith.constant dense<0.000000e+00> : vector<8x32xf32>
    %19 = tpu.matmul %17, %18, %cst_14 {dimension_numbers = #tpu.dot_dimension_numbers<[1], [0], [0], [1], [0, 0, 1, 1], [], []>} : vector<8x64xbf16>, vector<64x32xbf16>, vector<8x32xf32> -> vector<8x32xf32>
    %c0_15 = arith.constant 0 : index
    %c0_16 = arith.constant 0 : index
    %20 = vector.load %arg7[%c0_15, %c0_16] : memref<1x32xf32, #tpu.memory_space<vmem>>, vector<1x32xf32>
    %21 = vector.broadcast %20 : vector<1x32xf32> to vector<8x32xf32>
    %22 = arith.addf %19, %21 : vector<8x32xf32>
    %cst_17 = arith.constant 0.000000e+00 : f32
    %23 = vector.broadcast %cst_17 : f32 to vector<8x32xf32>
    %24 = arith.maximumf %22, %23 : vector<8x32xf32>
    %25 = arith.truncf %24 : vector<8x32xf32> to vector<8x32xbf16>
    %c0_18 = arith.constant 0 : index
    %c0_19 = arith.constant 0 : index
    %26 = vector.load %arg8[%c0_18, %c0_19] : memref<32x4xbf16, #tpu.memory_space<vmem>>, vector<32x4xbf16>
    %cst_20 = arith.constant dense<0.000000e+00> : vector<8x4xf32>
    %27 = tpu.matmul %25, %26, %cst_20 {dimension_numbers = #tpu.dot_dimension_numbers<[1], [0], [0], [1], [0, 0, 1, 1], [], []>} : vector<8x32xbf16>, vector<32x4xbf16>, vector<8x4xf32> -> vector<8x4xf32>
    %c0_21 = arith.constant 0 : index
    %c0_22 = arith.constant 0 : index
    %28 = vector.load %arg9[%c0_21, %c0_22] : memref<1x4xf32, #tpu.memory_space<vmem>>, vector<1x4xf32>
    %29 = vector.broadcast %28 : vector<1x4xf32> to vector<8x4xf32>
    %30 = arith.addf %27, %29 : vector<8x4xf32>
    %c0_23 = arith.constant 0 : index
    %c0_24 = arith.constant 0 : index
    %31 = vector.load %arg10[%c0_23, %c0_24] : memref<8x4xf32, #tpu.memory_space<vmem>>, vector<8x4xf32>
    tpu.vector_store %arg10[%c0_23, %c0_24], %30 {strides = array<i32>} : memref<8x4xf32, #tpu.memory_space<vmem>>, vector<8x4xf32>,
    return
  }
  func.func @transform_0(%arg0: i32) -> (i32, i32) {
    %c0_i32 = arith.constant 0 : i32
    %c0_i32_0 = arith.constant 0 : i32
    return %arg0, %c0_i32 : i32, i32
  }
  func.func @transform_1(%arg0: i32) -> (i32, i32) {
    %c0_i32 = arith.constant 0 : i32
    %c0_i32_0 = arith.constant 0 : i32
    %c0_i32_1 = arith.constant 0 : i32
    return %c0_i32, %c0_i32_0 : i32, i32
  }
  func.func @transform_2(%arg0: i32) -> (i32, i32) {
    %c0_i32 = arith.constant 0 : i32
    %c0_i32_0 = arith.constant 0 : i32
    %c0_i32_1 = arith.constant 0 : i32
    return %c0_i32, %c0_i32_0 : i32, i32
  }
  func.func @transform_3(%arg0: i32) -> (i32, i32) {
    %c0_i32 = arith.constant 0 : i32
    %c0_i32_0 = arith.constant 0 : i32
    %c0_i32_1 = arith.constant 0 : i32
    return %c0_i32, %c0_i32_0 : i32, i32
  }
  func.func @transform_4(%arg0: i32) -> (i32, i32) {
    %c0_i32 = arith.constant 0 : i32
    %c0_i32_0 = arith.constant 0 : i32
    %c0_i32_1 = arith.constant 0 : i32
    return %c0_i32, %c0_i32_0 : i32, i32
  }
  func.func @transform_5(%arg0: i32) -> (i32, i32) {
    %c0_i32 = arith.constant 0 : i32
    %c0_i32_0 = arith.constant 0 : i32
    %c0_i32_1 = arith.constant 0 : i32
    return %c0_i32, %c0_i32_0 : i32, i32
  }
  func.func @transform_6(%arg0: i32) -> (i32, i32) {
    %c0_i32 = arith.constant 0 : i32
    %c0_i32_0 = arith.constant 0 : i32
    %c0_i32_1 = arith.constant 0 : i32
    return %c0_i32, %c0_i32_0 : i32, i32
  }
  func.func @transform_7(%arg0: i32) -> (i32, i32) {
    %c0_i32 = arith.constant 0 : i32
    %c0_i32_0 = arith.constant 0 : i32
    %c0_i32_1 = arith.constant 0 : i32
    return %c0_i32, %c0_i32_0 : i32, i32
  }
  func.func @transform_8(%arg0: i32) -> (i32, i32) {
    %c0_i32 = arith.constant 0 : i32
    %c0_i32_0 = arith.constant 0 : i32
    %c0_i32_1 = arith.constant 0 : i32
    return %c0_i32, %c0_i32_0 : i32, i32
  }
  func.func @transform_9(%arg0: i32) -> (i32, i32) {
    %c0_i32 = arith.constant 0 : i32
    %c0_i32_0 = arith.constant 0 : i32
    return %arg0, %c0_i32 : i32, i32
  }
}

</mosaic_0001>

<bundles_post_ra>
// kernel: tpu_custom_call.1
= control target key start
LH: loop header
LB: loop body
LE: loop exit
PB: predicated region body
PF: predicated region fallthrough
CT: control target
= control target key end

     0   :  { %v471_v0 = vmov 0.0   ;;  %vm472_vm0 = vmmov 0   ;;  %vm50_vm1 = vcmask 130048   ;;  %vm248_vm2 = vcmask 523264   ;;  %s609_s1 = inlined_call_operand.vmem [shape: bf16[16,128], index: 1, kind: input, shape index: {}]   ;;  %s610_s0 = inlined_call_operand.vmem [shape: f32[8,16], index: 0, kind: input, shape index: {}]   ;;  %s611_s3 = inlined_call_operand.vmem [shape: bf16[128,64], index: 3, kind: input, shape index: {}]   ;;  %s612_s5 = inlined_call_operand.vmem [shape: bf16[64,32], index: 5, kind: input, shape index: {}]   ;;  %s613_s2 = inlined_call_operand.vmem [shape: f32[1,128], index: 2, kind: input, shape index: {}]   ;;  %s614_s7 = inlined_call_operand.vmem [shape: bf16[32,4], index: 7, kind: input, shape index: {}]   ;;  %s615_s4 = inlined_call_operand.vmem [shape: f32[1,64], index: 4, kind: input, shape index: {}]   ;;  %s616_s6 = inlined_call_operand.vmem [shape: f32[1,32], index: 6, kind: input, shape index: {}]   ;;  %s617_s8 = inlined_call_operand.vmem [shape: f32[1,4], index: 8, kind: input, shape index: {}]   ;;  %s618_s9 = inlined_call_operand.vmem [shape: f32[8,4], index: 9, kind: output, shape index: {}]  }
   0x1   :  { %408 = vmatprep.subr.bf16.mxu0 %v471_v0  ;;  %v456_v1 = vld [vmem:[%s609_s1] sm:$0xff]   ;;  %410 = vmatprep.mubr.msk.bf16.mxu0 %vm472_vm0, %v471_v0  ;;  %v457_v4 = vld [vmem:[%s611_s3 + $0x38] sm:$0xff]   ;;  %v458_v5 = vld [vmem:[%s611_s3 + $0x30] sm:$0xff]   ;;  %vm317_vm3 = vcmask 261120   ;;  %vm361_vm4 = vcmask 31744  }
   0x2   :  { %v33_v2 = vld [vmem:[%s610_s0] sm:$0xff]  ;;  %414 = vmatprep.subr.bf16.mxu1 %v471_v0  ;;  %430 = vmatprep.mubr.msk.bf16.mxu1 %vm472_vm0, %v471_v0  ;;  %v459_v6 = vld [vmem:[%s611_s3 + $0x28] sm:$0xff]   ;;  %v461_v8 = vld [vmem:[%s611_s3 + $0x18] sm:$0xff]  }
   0x3   :  { %409 = vmatpush3.bf16.msra.mxu0 %v456_v1  ;;  %v34_v3 = vpack.c.bf16 %v33_v2, %v33_v2  ;;  %415 = vmatpush3.bf16.msra.mxu1 %v457_v4  ;;  %v460_v7 = vld [vmem:[%s611_s3 + $0x20] sm:$0xff]   ;;  %v462_v9 = vld [vmem:[%s611_s3 + $0x10] sm:$0xff]   ;;  %v463_v10 = vld [vmem:[%s611_s3 + $0x8] sm:$0xff]  }
   0x4   :  { %434 = vmatprep.subr.bf16.mxu0 %v471_v0  ;;  %416 = vmatprep.subr.bf16.mxu1 %v471_v0  ;;  %v464_v11 = vld [vmem:[%s611_s3] sm:$0xff]   ;;  %v465_v12 = vld [vmem:[%s612_s5 + $0x18] sm:$0xff]   ;;  %v466_v13 = vld [vmem:[%s612_s5 + $0x10] sm:$0xff]  }
   0x5   :  { %v367_v14 = vld [vmem:[%s613_s2] ss:$0 sm:$0xff]  ;;  %v467_v22 = vld [vmem:[%s612_s5 + $0x8] sm:$0xff]  }
   0x6   :  { %411 = vmatmul.mubr.msk.bf16.vlgmr.msra.gmra.mxu0 %vm50_vm1, %v34_v3  ;;  %v468_v23 = vld [vmem:[%s612_s5] sm:$0xff]   ;;  %v469_v30 = vld [vmem:[%s614_s7 + $0x8] sm:$0xff]  }
   0x7   :  { %442 = vmatprep.mubr.msk.bf16.mxu0 %vm472_vm0, %v471_v0  ;;  %417 = vmatpush3.bf16.msra.mxu1 %v458_v5  ;;  %v370_v24 = vld [vmem:[%s615_s4] ss:$0 sm:$0xff] }
   0x8   :  { %418 = vmatprep.subr.bf16.mxu1 %v471_v0  ;;  %435 = vmatpush3.bf16.msra.mxu0 %v465_v12  ;;  %v470_v33 = vld [vmem:[%s614_s7] sm:$0xff]  }
   0x9   :  { %436 = vmatprep.subr.bf16.mxu0 %v471_v0  ;;  %v379_v34 = vld [vmem:[%s616_s6] ss:$0 sm:$0xff] }
   0xa   :  { %v385_v42 = vld [vmem:[%s617_s8] ss:$0 sm:$0xff] }
   0xb   :  { %419 = vmatpush3.bf16.msra.mxu1 %v459_v6 }
   0xc   :  { %420 = vmatprep.subr.bf16.mxu1 %v471_v0  ;;  %437 = vmatpush3.bf16.msra.mxu0 %v466_v13 }
   0xd   :  { %438 = vmatprep.subr.bf16.mxu0 %v471_v0 }
   0xf   :  { %421 = vmatpush3.bf16.msra.mxu1 %v460_v7 }
  0x10   :  { %422 = vmatprep.subr.bf16.mxu1 %v471_v0  ;;  %439 = vmatpush3.bf16.msra.mxu0 %v467_v22 }
  0x11   :  { %440 = vmatprep.subr.bf16.mxu0 %v471_v0 }
  0x13   :  { %423 = vmatpush3.bf16.msra.mxu1 %v461_v8 }
  0x14   :  { %424 = vmatprep.subr.bf16.mxu1 %v471_v0  ;;  %441 = vmatpush3.bf16.msra.mxu0 %v468_v23 }
  0x15   :  { %446 = vmatprep.subr.bf16.mxu0 %v471_v0 }
  0x17   :  { %425 = vmatpush3.bf16.msra.mxu1 %v462_v9 }
  0x18   :  { %426 = vmatprep.subr.bf16.mxu1 %v471_v0 }
  0x1b   :  { %427 = vmatpush3.bf16.msra.mxu1 %v463_v10 }
  0x1c   :  { %428 = vmatprep.subr.bf16.mxu1 %v471_v0 }
  0x1f   :  { %429 = vmatpush3.bf16.msra.mxu1 %v464_v11 }
  0xc6   :  { %v88_v15 = vpop.f32.mrf.mxu0 }
  0xc7   :  { %v89_v16 = vadd.f32 %v367_v14, %v88_v15 }
  0xc8   :  { %v412_v17 = vpop.f32.mrf.mxu0 }
  0xc9   :  { %v94_v18 = vmax.f32 %v89_v16, 0.0 }
  0xca   :  { %v91_v19 = vpop.f32.mrf.mxu0 }
  0xcb   :  { %v95_v20 = vpack.c.bf16 %v94_v18, %v94_v18 }
  0xcc   :  { %v413_v21 = vpop.f32.mrf.mxu0 }
  0xcd   :  { %431 = vmatmul.mubr.bf16.vlgmr.msra.gmra.mxu1 %v95_v20 }
 0x18d   :  { %v201_v25 = vpop.f32.mrf.mxu1 }
 0x18e   :  { %v202_v26 = vadd.f32 %v370_v24, %v201_v25 }
 0x18f   :  { %v432_v27 = vpop.f32.mrf.mxu1 }
 0x190   :  { %v207_v28 = vmax.f32 %v202_v26, 0.0 }
 0x191   :  { %v204_v29 = vpop.f32.mrf.mxu1 }
 0x192   :  { %v208_v31 = vpack.c.bf16 %v207_v28, %v207_v28 }
 0x193   :  { %v433_v32 = vpop.f32.mrf.mxu1 }
 0x194   :  { %443 = vmatmul.mubr.msk.bf16.vlgmr.msra.gmra.mxu0 %vm248_vm2, %v208_v31 }
 0x195   :  { %447 = vmatpush3.bf16.msra.mxu0 %v469_v30  ;;  %450 = vmatprep.mubr.msk.bf16.mxu0 %vm472_vm0, %v471_v0 }
 0x196   :  { %448 = vmatprep.subr.bf16.mxu0 %v471_v0 }
 0x199   :  { %449 = vmatpush3.bf16.msra.mxu0 %v470_v33 }
 0x254   :  { %v286_v35 = vpop.f32.mrf.mxu0 }
 0x255   :  { %v287_v36 = vadd.f32 %v379_v34, %v286_v35 }
 0x256   :  { %v444_v37 = vpop.f32.mrf.mxu0 }
 0x257   :  { %v292_v38 = vmax.f32 %v287_v36, 0.0 }
 0x258   :  { %v289_v39 = vpop.f32.mrf.mxu0 }
 0x259   :  { %v293_v40 = vpack.c.bf16 %v292_v38, %v292_v38 }
 0x25a   :  { %v445_v41 = vpop.f32.mrf.mxu0 }
 0x25b   :  { %451 = vmatmul.mubr.msk.bf16.vlgmr.msra.gmra.mxu0 %vm317_vm3, %v293_v40 }
 0x31b   :  { %v355_v43 = vpop.f32.mrf.mxu0 }
 0x31c   :  { %v356_v44 = vadd.f32 %v385_v42, %v355_v43 }
 0x31d   :  { %v452_v45 = vpop.f32.mrf.mxu0 }
 0x31e   :  { %362 = vst.msk [vmem:[%s618_s9] sm:$0xff] %vm361_vm4, %v356_v44 }
 0x31f   :  { %v358_v46 = vpop.f32.mrf.mxu0 }
 0x321   :  { %v453_v47 = vpop.f32.mrf.mxu0 }

</bundles_post_ra>
